<compile_context>
chip_gen: v6e
topology: v6e:2x2x1
jax: 0.10.0
libtpu: 0.0.40
codegen_flags: <defaults>
</compile_context>

<pallas_src>
import functools

import jax
import jax.numpy as jnp
from jax.experimental import pallas as pl

_LANE = 128        # TPU lane width: keep hidden/output minor dims lane-dense.
_NEG_BIAS = -1e30  # bias on padded action columns -> exp underflows to exact 0


# ----------------------------------------------------------------------------
# Kernel (one grid step: everything VMEM-resident)
# ----------------------------------------------------------------------------
def actor_kernel(x_ref, w1_ref, b1_ref, w2_ref, b2_ref, w3_ref, b3_ref, o_ref):
    x = x_ref[...]                                            # (B, in_dim)

    # fc1 + ReLU
    h1 = jnp.dot(x, w1_ref[...], preferred_element_type=jnp.float32) + b1_ref[...]
    h1 = jnp.maximum(h1, 0.0)

    # fc2 + ReLU
    h2 = jnp.dot(h1, w2_ref[...], preferred_element_type=jnp.float32) + b2_ref[...]
    h2 = jnp.maximum(h2, 0.0)

    # pi logits + numerically-stable softmax over the (padded, lane-dense)
    # action axis. Padded columns have a -1e30 bias -> exp == 0, so they add
    # nothing to the denominator and real columns match torch.softmax(dim=1).
    logits = jnp.dot(h2, w3_ref[...], preferred_element_type=jnp.float32) + b3_ref[...]
    m = jnp.max(logits, axis=-1, keepdims=True)
    e = jnp.exp(logits - m)
    denom = jnp.sum(e, axis=-1, keepdims=True)
    o_ref[...] = (e / denom).astype(o_ref.dtype)              # exact reciprocal


# ----------------------------------------------------------------------------
# One-time parameter layout conversion (NOT per forward)
# ----------------------------------------------------------------------------
def _round_up(n, mult):
    return ((n + mult - 1) // mult) * mult


def prepare_params(params):
    """PyTorch layout -> kernel layout. Call once after init / each update.

    * weights transposed to (in, out)
    * hidden dims zero-padded to a multiple of 128 (numerically exact: padded
      units are relu(0)=0 and feed all-zero weight rows downstream)
    * action dim padded to a multiple of 128 with a -1e30 bias so padded
      probabilities are exactly 0 -> kernel output block is lane-dense
    """
    W1, b1 = params["W1"], params["b1"]   # (f1, in), (f1,)
    W2, b2 = params["W2"], params["b2"]   # (f2, f1), (f2,)
    W3, b3 = params["W3"], params["b3"]   # (na, f2), (na,)

    f1, in_dim = W1.shape
    f2 = W2.shape[0]
    na = W3.shape[0]
    f1p = _round_up(f1, _LANE)
    f2p = _round_up(f2, _LANE)
    nap = _round_up(na, _LANE)

    f32 = jnp.float32
    w1t = jnp.zeros((in_dim, f1p), f32).at[:, :f1].set(W1.T)
    b1r = jnp.zeros((1, f1p), f32).at[:, :f1].set(b1)
    w2t = jnp.zeros((f1p, f2p), f32).at[:f1, :f2].set(W2.T)
    b2r = jnp.zeros((1, f2p), f32).at[:, :f2].set(b2)
    w3t = jnp.zeros((f2p, nap), f32).at[:f2, :na].set(W3.T)
    b3r = jnp.full((1, nap), _NEG_BIAS, f32).at[:, :na].set(b3)

    return {"w1t": w1t, "b1r": b1r, "w2t": w2t, "b2r": b2r, "w3t": w3t, "b3r": b3r}


# ----------------------------------------------------------------------------
# Forward wrapper
# ----------------------------------------------------------------------------
@functools.partial(jax.jit, static_argnames=("n_actions",))
def actor_forward(state, prep, *, n_actions):
    """state: (B, input_dims) f32. prep: output of prepare_params()."""
    w1t, b1r = prep["w1t"], prep["b1r"]
    w2t, b2r = prep["w2t"], prep["b2r"]
    w3t, b3r = prep["w3t"], prep["b3r"]

    B, in_dim = state.shape
    f1p = w1t.shape[1]
    f2p = w2t.shape[1]
    nap = w3t.shape[1]

    cost = pl.CostEstimate(
        flops=2 * B * (in_dim * f1p + f1p * f2p + f2p * nap),
        transcendentals=B * nap,  # exp per (padded) logit
        bytes_accessed=4 * (state.size + w1t.size + w2t.size + w3t.size
                            + b1r.size + b2r.size + b3r.size + B * nap),
    )

    # Single grid step: every operand is one full-array VMEM-resident block.
    full = lambda shape: pl.BlockSpec(shape, lambda i: (0, 0))

    pi_padded = pl.pallas_call(
        actor_kernel,
        out_shape=jax.ShapeDtypeStruct((B, nap), jnp.float32),
        grid=(1,),
        in_specs=[
            full((B, in_dim)),
            full((in_dim, f1p)), full((1, f1p)),
            full((f1p, f2p)),    full((1, f2p)),
            full((f2p, nap)),    full((1, nap)),
        ],
        out_specs=full((B, nap)),
        cost_estimate=cost,
    )(state, w1t, b1r, w2t, b2r, w3t, b3r)

    # Padded action columns are exactly 0; drop them.
    return pi_padded[:, :n_actions]


# ----------------------------------------------------------------------------
# Init + pure-JAX reference
# ----------------------------------------------------------------------------
def init_params(key, input_dims, fc1_dims, fc2_dims, n_actions):
    """Deterministic init mimicking nn.Linear default (uniform +-1/sqrt(fan_in))."""
    ks = jax.random.split(key, 6)

    def linear(kw, kb, fan_in, fan_out):
        bound = 1.0 / jnp.sqrt(jnp.float32(fan_in))
        W = jax.random.uniform(kw, (fan_out, fan_in), jnp.float32, -bound, bound)
        b = jax.random.uniform(kb, (fan_out,), jnp.float32, -bound, bound)
        return W, b

    W1, b1 = linear(ks[0], ks[1], input_dims, fc1_dims)
    W2, b2 = linear(ks[2], ks[3], fc1_dims, fc2_dims)
    W3, b3 = linear(ks[4], ks[5], fc2_dims, n_actions)
    return {"W1": W1, "b1": b1, "W2": W2, "b2": b2, "W3": W3, "b3": b3}


def reference_forward(state, params):
    """Pure-JAX reference of the PyTorch forward for correctness checking."""
    x = jnp.maximum(state @ params["W1"].T + params["b1"], 0.0)
    x = jnp.maximum(x @ params["W2"].T + params["b2"], 0.0)
    logits = x @ params["W3"].T + params["b3"]
    return jax.nn.softmax(logits, axis=1)


# ----------------------------------------------------------------------------
# Demo / self-test
# ----------------------------------------------------------------------------
if __name__ == "__main__":
    key = jax.random.PRNGKey(0)
    k_param, k_state = jax.random.split(key)

    batch = 8
    input_dims = 16
    fc1_dims = 64
    fc2_dims = 64
    n_actions = 8

    params = init_params(k_param, input_dims, fc1_dims, fc2_dims, n_actions)
    prep = prepare_params(params)  # one-time layout conversion (NOT per call)
    state = jax.random.normal(k_state, (batch, input_dims), dtype=jnp.float32)

    pi = actor_forward(state, prep, n_actions=n_actions)
    pi = jax.block_until_ready(pi)

    ref = reference_forward(state, params)
    assert pi.shape == (batch, n_actions)
    assert jnp.allclose(pi, ref, atol=1e-3, rtol=1e-3), "mismatch vs JAX reference"
    assert jnp.allclose(jnp.sum(pi, axis=1), 1.0, atol=1e-3), "softmax rows must sum to ~1"

    print("KERNEL_OK")
</pallas_src>

<mosaic_0001>
module attributes {stable_mosaic.version = 11 : i64} {
  func.func @actor_kernel(%arg0: i32, %arg1: memref<8x16xf32, #tpu.memory_space<vmem>>, %arg2: memref<16x128xf32, #tpu.memory_space<vmem>>, %arg3: memref<1x128xf32, #tpu.memory_space<vmem>>, %arg4: memref<128x128xf32, #tpu.memory_space<vmem>>, %arg5: memref<1x128xf32, #tpu.memory_space<vmem>>, %arg6: memref<128x128xf32, #tpu.memory_space<vmem>>, %arg7: memref<1x128xf32, #tpu.memory_space<vmem>>, %arg8: memref<8x128xf32, #tpu.memory_space<vmem>>) attributes {dimension_semantics = [#tpu.dimension_semantics<arbitrary>], iteration_bounds = array<i64: 1>, scalar_prefetch = 0 : i64, scratch_operands = 0 : i64, tpu.core_type = #tpu.core_type<tc>, window_params = [{pipeline_mode = #tpu.pipeline_mode<synchronous>, transform_indices = @transform_0, window_bounds = array<i64: 8, 16>}, {pipeline_mode = #tpu.pipeline_mode<synchronous>, transform_indices = @transform_1, window_bounds = array<i64: 16, 128>}, {pipeline_mode = #tpu.pipeline_mode<synchronous>, transform_indices = @transform_2, window_bounds = array<i64: 1, 128>}, {pipeline_mode = #tpu.pipeline_mode<synchronous>, transform_indices = @transform_3, window_bounds = array<i64: 128, 128>}, {pipeline_mode = #tpu.pipeline_mode<synchronous>, transform_indices = @transform_4, window_bounds = array<i64: 1, 128>}, {pipeline_mode = #tpu.pipeline_mode<synchronous>, transform_indices = @transform_5, window_bounds = array<i64: 128, 128>}, {pipeline_mode = #tpu.pipeline_mode<synchronous>, transform_indices = @transform_6, window_bounds = array<i64: 1, 128>}, {pipeline_mode = #tpu.pipeline_mode<synchronous>, transform_indices = @transform_7, window_bounds = array<i64: 8, 128>}]} {
    %c0 = arith.constant 0 : index
    %c0_0 = arith.constant 0 : index
    %0 = vector.load %arg1[%c0, %c0_0] : memref<8x16xf32, #tpu.memory_space<vmem>>, vector<8x16xf32>
    %c0_1 = arith.constant 0 : index
    %c0_2 = arith.constant 0 : index
    %1 = vector.load %arg2[%c0_1, %c0_2] : memref<16x128xf32, #tpu.memory_space<vmem>>, vector<16x128xf32>
    %cst = arith.constant dense<0.000000e+00> : vector<8x128xf32>
    %2 = tpu.matmul %0, %1, %cst {dimension_numbers = #tpu.dot_dimension_numbers<[1], [0], [0], [1], [0, 0, 1, 1], [], []>} : vector<8x16xf32>, vector<16x128xf32>, vector<8x128xf32> -> vector<8x128xf32>
    %c0_3 = arith.constant 0 : index
    %c0_4 = arith.constant 0 : index
    %3 = vector.load %arg3[%c0_3, %c0_4] : memref<1x128xf32, #tpu.memory_space<vmem>>, vector<1x128xf32>
    %4 = vector.broadcast %3 : vector<1x128xf32> to vector<8x128xf32>
    %5 = arith.addf %2, %4 : vector<8x128xf32>
    %cst_5 = arith.constant 0.000000e+00 : f32
    %6 = vector.broadcast %cst_5 : f32 to vector<8x128xf32>
    %7 = arith.maximumf %5, %6 : vector<8x128xf32>
    %c0_6 = arith.constant 0 : index
    %c0_7 = arith.constant 0 : index
    %8 = vector.load %arg4[%c0_6, %c0_7] : memref<128x128xf32, #tpu.memory_space<vmem>>, vector<128x128xf32>
    %cst_8 = arith.constant dense<0.000000e+00> : vector<8x128xf32>
    %9 = tpu.matmul %7, %8, %cst_8 {dimension_numbers = #tpu.dot_dimension_numbers<[1], [0], [0], [1], [0, 0, 1, 1], [], []>} : vector<8x128xf32>, vector<128x128xf32>, vector<8x128xf32> -> vector<8x128xf32>
    %c0_9 = arith.constant 0 : index
    %c0_10 = arith.constant 0 : index
    %10 = vector.load %arg5[%c0_9, %c0_10] : memref<1x128xf32, #tpu.memory_space<vmem>>, vector<1x128xf32>
    %11 = vector.broadcast %10 : vector<1x128xf32> to vector<8x128xf32>
    %12 = arith.addf %9, %11 : vector<8x128xf32>
    %cst_11 = arith.constant 0.000000e+00 : f32
    %13 = vector.broadcast %cst_11 : f32 to vector<8x128xf32>
    %14 = arith.maximumf %12, %13 : vector<8x128xf32>
    %c0_12 = arith.constant 0 : index
    %c0_13 = arith.constant 0 : index
    %15 = vector.load %arg6[%c0_12, %c0_13] : memref<128x128xf32, #tpu.memory_space<vmem>>, vector<128x128xf32>
    %cst_14 = arith.constant dense<0.000000e+00> : vector<8x128xf32>
    %16 = tpu.matmul %14, %15, %cst_14 {dimension_numbers = #tpu.dot_dimension_numbers<[1], [0], [0], [1], [0, 0, 1, 1], [], []>} : vector<8x128xf32>, vector<128x128xf32>, vector<8x128xf32> -> vector<8x128xf32>
    %c0_15 = arith.constant 0 : index
    %c0_16 = arith.constant 0 : index
    %17 = vector.load %arg7[%c0_15, %c0_16] : memref<1x128xf32, #tpu.memory_space<vmem>>, vector<1x128xf32>
    %18 = vector.broadcast %17 : vector<1x128xf32> to vector<8x128xf32>
    %19 = arith.addf %16, %18 : vector<8x128xf32>
    %cst_17 = arith.constant dense<0xFF800000> : vector<8xf32>
    %20 = vector.multi_reduction <maximumf>, %19, %cst_17 [1] : vector<8x128xf32> to vector<8xf32>
    %21 = vector.shape_cast %20 : vector<8xf32> to vector<8x1xf32>
    %22 = vector.broadcast %21 : vector<8x1xf32> to vector<8x128xf32>
    %23 = arith.subf %19, %22 : vector<8x128xf32>
    %24 = math.exp %23 : vector<8x128xf32>
    %cst_18 = arith.constant dense<0.000000e+00> : vector<8xf32>
    %25 = vector.multi_reduction <add>, %24, %cst_18 [1] : vector<8x128xf32> to vector<8xf32>
    %26 = vector.shape_cast %25 : vector<8xf32> to vector<8x1xf32>
    %27 = vector.broadcast %26 : vector<8x1xf32> to vector<8x128xf32>
    %28 = arith.divf %24, %27 : vector<8x128xf32>
    %c0_19 = arith.constant 0 : index
    %c0_20 = arith.constant 0 : index
    %29 = vector.load %arg8[%c0_19, %c0_20] : memref<8x128xf32, #tpu.memory_space<vmem>>, vector<8x128xf32>
    tpu.vector_store %arg8[%c0_19, %c0_20], %28 {strides = array<i32>} : memref<8x128xf32, #tpu.memory_space<vmem>>, vector<8x128xf32>,
    return
  }
  func.func @transform_0(%arg0: i32) -> (i32, i32) {
    %c0_i32 = arith.constant 0 : i32
    %c0_i32_0 = arith.constant 0 : i32
    %c0_i32_1 = arith.constant 0 : i32
    return %c0_i32, %c0_i32_0 : i32, i32
  }
  func.func @transform_1(%arg0: i32) -> (i32, i32) {
    %c0_i32 = arith.constant 0 : i32
    %c0_i32_0 = arith.constant 0 : i32
    %c0_i32_1 = arith.constant 0 : i32
    return %c0_i32, %c0_i32_0 : i32, i32
  }
  func.func @transform_2(%arg0: i32) -> (i32, i32) {
    %c0_i32 = arith.constant 0 : i32
    %c0_i32_0 = arith.constant 0 : i32
    %c0_i32_1 = arith.constant 0 : i32
    return %c0_i32, %c0_i32_0 : i32, i32
  }
  func.func @transform_3(%arg0: i32) -> (i32, i32) {
    %c0_i32 = arith.constant 0 : i32
    %c0_i32_0 = arith.constant 0 : i32
    %c0_i32_1 = arith.constant 0 : i32
    return %c0_i32, %c0_i32_0 : i32, i32
  }
  func.func @transform_4(%arg0: i32) -> (i32, i32) {
    %c0_i32 = arith.constant 0 : i32
    %c0_i32_0 = arith.constant 0 : i32
    %c0_i32_1 = arith.constant 0 : i32
    return %c0_i32, %c0_i32_0 : i32, i32
  }
  func.func @transform_5(%arg0: i32) -> (i32, i32) {
    %c0_i32 = arith.constant 0 : i32
    %c0_i32_0 = arith.constant 0 : i32
    %c0_i32_1 = arith.constant 0 : i32
    return %c0_i32, %c0_i32_0 : i32, i32
  }
  func.func @transform_6(%arg0: i32) -> (i32, i32) {
    %c0_i32 = arith.constant 0 : i32
    %c0_i32_0 = arith.constant 0 : i32
    %c0_i32_1 = arith.constant 0 : i32
    return %c0_i32, %c0_i32_0 : i32, i32
  }
  func.func @transform_7(%arg0: i32) -> (i32, i32) {
    %c0_i32 = arith.constant 0 : i32
    %c0_i32_0 = arith.constant 0 : i32
    %c0_i32_1 = arith.constant 0 : i32
    return %c0_i32, %c0_i32_0 : i32, i32
  }
}

</mosaic_0001>

<bundles_post_ra>
// kernel: actor_forward.1
= control target key start
LH: loop header
LB: loop body
LE: loop exit
PB: predicated region body
PF: predicated region fallthrough
CT: control target
= control target key end

     0   :  { %12 = vsyncpa [#allocation3], 0  ;;  %s740_s0 = inlined_call_operand.hbm [shape: f32[8,16], index: 0, kind: input, shape index: {}]   ;;  %s741_s1 = inlined_call_operand.hbm [shape: f32[16,128], index: 1, kind: input, shape index: {}]   ;;  %s742_s2 = inlined_call_operand.vmem [shape: f32[1,128], index: 2, kind: input, shape index: {}]   ;;  %s743_s3 = inlined_call_operand.hbm [shape: f32[128,128], index: 3, kind: input, shape index: {}]   ;;  %s744_s4 = inlined_call_operand.vmem [shape: f32[1,128], index: 4, kind: input, shape index: {}]   ;;  %s745_s5 = inlined_call_operand.hbm [shape: f32[128,128], index: 5, kind: input, shape index: {}]   ;;  %s746_s6 = inlined_call_operand.vmem [shape: f32[1,128], index: 6, kind: input, shape index: {}]   ;;  %s747_s7 = inlined_call_operand.hbm [shape: f32[8,128], index: 7, kind: output, shape index: {}]  }
   0x1   :  { %13 = vsyncpa [#allocation6], 0 }
   0x2   :  { %14 = vsyncpa [#allocation9], 0 }
   0x3   :  { %15 = vsyncpa [#allocation4], 0  ;;  %s618_s24 = smov [#allocation5]  }
   0x4   :  { %s31_s25 = sshll.u32 %s618_s24, 4  ;;  %s32_s25 = int_to_ptr.vmem [resolvable:$true] %s31_s25 }
   0x5   :  { %s518_s26 = scalar_lea.vmem %s32_s25, 256  ;;  %p523_p1 = scmp.lt.s32.totalorder %s32_s25, %s32_s25 }
   0x6   :  { %p519_p0 = scmp.ne.s32.totalorder %s32_s25, %s518_s26  ;;  %p524_p2 = scmp.lt.s32.totalorder %s518_s26, %s518_s26 }
   0x8   :  { %p525_p3 = por %p524_p2, %p523_p1 }
   0xa   :  { %p526_p4 = pnand %p525_p3, %p519_p0 }
   0xc   :  { %529 = shalt.err (!%p526_p4)
}
   0xd   :  { %s619_s27 = smov 128   ;;  %s620_s28 = smov 8  }
   0xe   :  { %37 = dma.hbm_to_vmem [thread:$0]  %s741_s1, 256, %s32_s25, [#allocation6], %s619_s27, %s619_s27, %s620_s28  }
   0xf   :  { %s621_s8 = smov [#allocation2]   ;;  %s622_s10 = smov [#allocation7]  }
  0x10   :  { %s22_s9 = sshll.u32 %s621_s8, 4  ;;  %s45_s11 = sshll.u32 %s622_s10, 4  ;;  %s23_s9 = int_to_ptr.vmem [resolvable:$true] %s22_s9  ;;  %s46_s11 = int_to_ptr.vmem [resolvable:$true] %s45_s11 }
  0x11   :  { %s538_s12 = scalar_lea.vmem %s23_s9, 128  ;;  %p543_p6 = scmp.lt.s32.totalorder %s23_s9, %s23_s9 }
  0x12   :  { %p539_p5 = scmp.ne.s32.totalorder %s23_s9, %s538_s12  ;;  %p544_p7 = scmp.lt.s32.totalorder %s538_s12, %s538_s12 }
  0x14   :  { %p545_p8 = por %p544_p7, %p543_p6 }
  0x16   :  { %p546_p9 = pnand %p545_p8, %p539_p5 }
  0x18   :  { %549 = shalt.err (!%p546_p9)
}
  0x19   :  { %25 = dma.hbm_to_vmem [thread:$0]  %s740_s0, 128, %s23_s9, [#allocation3]  }
  0x1a   :  { %s558_s15 = scalar_lea.vmem %s46_s11, 2048  ;;  %p563_p11 = scmp.lt.s32.totalorder %s46_s11, %s46_s11 }
  0x1b   :  { %p559_p10 = scmp.ne.s32.totalorder %s46_s11, %s558_s15  ;;  %p564_p12 = scmp.lt.s32.totalorder %s558_s15, %s558_s15 }
  0x1d   :  { %p565_p13 = por %p564_p12, %p563_p11 }
  0x1f   :  { %p566_p0 = pnand %p565_p13, %p559_p10 }
  0x21   :  { %569 = shalt.err (!%p566_p0)
}
  0x22   :  { %51 = dma.hbm_to_vmem [thread:$0]  %s743_s3, 2048, %s46_s11, [#allocation6], %s619_s27, %s619_s27, %s620_s28  }
  0x23   :  { %s623_s17 = smov [#allocation8]  }
  0x24   :  { %s59_s18 = sshll.u32 %s623_s17, 4  ;;  %s60_s18 = int_to_ptr.vmem [resolvable:$true] %s59_s18 }
  0x25   :  { %s578_s19 = scalar_lea.vmem %s60_s18, 2048  ;;  %p583_p2 = scmp.lt.s32.totalorder %s60_s18, %s60_s18 }
  0x26   :  { %p579_p1 = scmp.ne.s32.totalorder %s60_s18, %s578_s19  ;;  %p584_p3 = scmp.lt.s32.totalorder %s578_s19, %s578_s19 }
  0x28   :  { %p585_p4 = por %p584_p3, %p583_p2 }
  0x2a   :  { %p586_p5 = pnand %p585_p4, %p579_p1 }
  0x2c   :  { %589 = shalt.err (!%p586_p5)
}
  0x2d   :  { %65 = dma.hbm_to_vmem [thread:$0]  %s745_s5, 2048, %s60_s18, [#allocation9], %s619_s27, %s619_s27, %s620_s28  }
  0x2e   :  { %610 = dma.done.wait [#allocation3], 128  }
  0x2f   :  { %611 = vsyncadd [#allocation3], 4294967168 }
  0x30   :  { %612 = dma.done.wait [#allocation6], 2304  }
  0x31   :  { %613 = vsyncadd [#allocation6], 4294964992 }
  0x32   :  { %614 = dma.done.wait [#allocation9], 2048  }
  0x33   :  { %615 = vsyncadd [#allocation9], 4294965248  ;;  %v624_v0 = vmov 0.0   ;;  %vm625_vm0 = vmmov 0   ;;  %v82_v1 = vld [vmem:[#allocation5 + $0x8] sm:$0xff]  ;;  %v81_v2 = vld [vmem:[#allocation5] sm:$0xff] }
  0x34   :  { %420 = vmatprep.subr.mxu0 %v624_v0  ;;  %424 = vmatprep.mubr.msk.f32.mxu0 %vm625_vm0, %v624_v0  ;;  %v80_v3 = vld [vmem:[#allocation2] sm:$0xff]  ;;  %vm90_vm1 = vcmask 130048   ;;  %v180_v4 = vld [vmem:[#allocation7 + $0x78] sm:$0xff]  ;;  %v179_v5 = vld [vmem:[#allocation7 + $0x70] sm:$0xff] }
  0x35   :  { %427 = vmatprep.subr.mxu1 %v624_v0  ;;  %459 = vmatprep.mubr.msk.f32.mxu1 %vm625_vm0, %v624_v0  ;;  %v178_v6 = vld [vmem:[#allocation7 + $0x68] sm:$0xff]  ;;  %v177_v7 = vld [vmem:[#allocation7 + $0x60] sm:$0xff]  ;;  %v176_v8 = vld [vmem:[#allocation7 + $0x58] sm:$0xff] }
  0x36   :  { %421 = vmatpush3.msra.mxu0 %v82_v1  ;;  %428 = vmatpush3.msra.mxu1 %v180_v4  ;;  %v175_v9 = vld [vmem:[#allocation7 + $0x50] sm:$0xff]  ;;  %v174_v10 = vld [vmem:[#allocation7 + $0x48] sm:$0xff]  ;;  %v173_v11 = vld [vmem:[#allocation7 + $0x40] sm:$0xff] }
  0x37   :  { %422 = vmatprep.subr.mxu0 %v624_v0  ;;  %429 = vmatprep.subr.mxu1 %v624_v0  ;;  %v172_v12 = vld [vmem:[#allocation7 + $0x38] sm:$0xff]  ;;  %v171_v13 = vld [vmem:[#allocation7 + $0x30] sm:$0xff]  ;;  %v170_v14 = vld [vmem:[#allocation7 + $0x28] sm:$0xff] }
  0x38   :  { %423 = vmatpush3.msra.mxu0 %v81_v2  ;;  %430 = vmatpush3.msra.mxu1 %v179_v5  ;;  %v169_v15 = vld [vmem:[#allocation7 + $0x20] sm:$0xff]  ;;  %v168_v16 = vld [vmem:[#allocation7 + $0x18] sm:$0xff]  ;;  %v167_v17 = vld [vmem:[#allocation7 + $0x10] sm:$0xff] }
  0x39   :  { %425 = vmatmul.mubr.msk.f32.vlgmr.msra.gmra.mxu0 %vm90_vm1, %v80_v3  ;;  %431 = vmatprep.subr.mxu1 %v624_v0  ;;  %v166_v18 = vld [vmem:[#allocation7 + $0x8] sm:$0xff]  ;;  %v165_v19 = vld [vmem:[#allocation7] sm:$0xff]  ;;  %v274_v20 = vld [vmem:[#allocation8 + $0x78] sm:$0xff] }
  0x3a   :  { %462 = vmatprep.subr.mxu0 %v624_v0  ;;  %432 = vmatpush3.msra.mxu1 %v178_v6  ;;  %v273_v21 = vld [vmem:[#allocation8 + $0x70] sm:$0xff]  ;;  %v272_v22 = vld [vmem:[#allocation8 + $0x68] sm:$0xff]  ;;  %v271_v23 = vld [vmem:[#allocation8 + $0x60] sm:$0xff] }
  0x3b   :  { %494 = vmatprep.mubr.msk.f32.mxu0 %vm625_vm0, %v624_v0  ;;  %433 = vmatprep.subr.mxu1 %v624_v0  ;;  %v270_v24 = vld [vmem:[#allocation8 + $0x58] sm:$0xff]  ;;  %v269_v25 = vld [vmem:[#allocation8 + $0x50] sm:$0xff]  ;;  %v268_v26 = vld [vmem:[#allocation8 + $0x48] sm:$0xff] }
  0x3c   :  { %434 = vmatpush3.msra.mxu1 %v177_v7  ;;  %463 = vmatpush3.msra.mxu0 %v274_v20  ;;  %v267_v27 = vld [vmem:[#allocation8 + $0x40] sm:$0xff]  ;;  %v266_v28 = vld [vmem:[#allocation8 + $0x38] sm:$0xff]  ;;  %v265_v29 = vld [vmem:[#allocation8 + $0x30] sm:$0xff] }
  0x3d   :  { %435 = vmatprep.subr.mxu1 %v624_v0  ;;  %464 = vmatprep.subr.mxu0 %v624_v0  ;;  %v264_v30 = vld [vmem:[#allocation8 + $0x28] sm:$0xff]  ;;  %v263_v31 = vld [vmem:[#allocation8 + $0x20] sm:$0xff]  ;;  %v262_v32 = vld [vmem:[#allocation8 + $0x18] sm:$0xff] }
  0x3e   :  { %436 = vmatpush3.msra.mxu1 %v176_v8  ;;  %465 = vmatpush3.msra.mxu0 %v273_v21  ;;  %v379_v33 = vld [vmem:[%s742_s2] ss:$0 sm:$0xff]  ;;  %v261_v38 = vld [vmem:[#allocation8 + $0x10] sm:$0xff]  ;;  %v259_v40 = vld [vmem:[#allocation8] sm:$0xff] }
  0x3f   :  { %437 = vmatprep.subr.mxu1 %v624_v0  ;;  %466 = vmatprep.subr.mxu0 %v624_v0  ;;  %v260_v39 = vld [vmem:[#allocation8 + $0x8] sm:$0xff] }
  0x40   :  { %438 = vmatpush3.msra.mxu1 %v175_v9  ;;  %467 = vmatpush3.msra.mxu0 %v272_v22  ;;  %v381_v41 = vld [vmem:[%s744_s4] ss:$0 sm:$0xff]  ;;  %s626_s4 = smov [#allocation10]  }
  0x41   :  { %439 = vmatprep.subr.mxu1 %v624_v0  ;;  %468 = vmatprep.subr.mxu0 %v624_v0  ;;  %v382_v46 = vld [vmem:[%s746_s6] ss:$0 sm:$0xff]  ;;  %s368_s24 = sshll.u32 %s626_s4, 4  ;;  %s369_s24 = int_to_ptr.vmem [resolvable:$true] %s368_s24 }
  0x42   :  { %440 = vmatpush3.msra.mxu1 %v174_v10  ;;  %469 = vmatpush3.msra.mxu0 %v271_v23  ;;  %s590_s25 = scalar_lea.vmem %s369_s24, 128  ;;  %p595_p7 = scmp.lt.s32.totalorder %s369_s24, %s369_s24 }
  0x43   :  { %441 = vmatprep.subr.mxu1 %v624_v0  ;;  %470 = vmatprep.subr.mxu0 %v624_v0  ;;  %p591_p6 = scmp.ne.s32.totalorder %s369_s24, %s590_s25  ;;  %p596_p8 = scmp.lt.s32.totalorder %s590_s25, %s590_s25 }
  0x44   :  { %442 = vmatpush3.msra.mxu1 %v173_v11  ;;  %471 = vmatpush3.msra.mxu0 %v270_v24 }
  0x45   :  { %443 = vmatprep.subr.mxu1 %v624_v0  ;;  %472 = vmatprep.subr.mxu0 %v624_v0  ;;  %p597_p9 = por %p596_p8, %p595_p7 }
  0x46   :  { %444 = vmatpush3.msra.mxu1 %v172_v12  ;;  %473 = vmatpush3.msra.mxu0 %v269_v25 }
  0x47   :  { %445 = vmatprep.subr.mxu1 %v624_v0  ;;  %474 = vmatprep.subr.mxu0 %v624_v0  ;;  %p598_p10 = pnand %p597_p9, %p591_p6 }
  0x48   :  { %446 = vmatpush3.msra.mxu1 %v171_v13  ;;  %475 = vmatpush3.msra.mxu0 %v268_v26 }
  0x49   :  { %447 = vmatprep.subr.mxu1 %v624_v0  ;;  %476 = vmatprep.subr.mxu0 %v624_v0 }
  0x4a   :  { %448 = vmatpush3.msra.mxu1 %v170_v14  ;;  %477 = vmatpush3.msra.mxu0 %v267_v27 }
  0x4b   :  { %449 = vmatprep.subr.mxu1 %v624_v0  ;;  %478 = vmatprep.subr.mxu0 %v624_v0 }
  0x4c   :  { %450 = vmatpush3.msra.mxu1 %v169_v15  ;;  %479 = vmatpush3.msra.mxu0 %v266_v28 }
  0x4d   :  { %451 = vmatprep.subr.mxu1 %v624_v0  ;;  %480 = vmatprep.subr.mxu0 %v624_v0 }
  0x4e   :  { %452 = vmatpush3.msra.mxu1 %v168_v16  ;;  %481 = vmatpush3.msra.mxu0 %v265_v29 }
  0x4f   :  { %453 = vmatprep.subr.mxu1 %v624_v0  ;;  %482 = vmatprep.subr.mxu0 %v624_v0 }
  0x50   :  { %454 = vmatpush3.msra.mxu1 %v167_v17  ;;  %483 = vmatpush3.msra.mxu0 %v264_v30 }
  0x51   :  { %455 = vmatprep.subr.mxu1 %v624_v0  ;;  %484 = vmatprep.subr.mxu0 %v624_v0 }
  0x52   :  { %456 = vmatpush3.msra.mxu1 %v166_v18  ;;  %485 = vmatpush3.msra.mxu0 %v263_v31 }
  0x53   :  { %457 = vmatprep.subr.mxu1 %v624_v0  ;;  %486 = vmatprep.subr.mxu0 %v624_v0 }
  0x54   :  { %458 = vmatpush3.msra.mxu1 %v165_v19  ;;  %487 = vmatpush3.msra.mxu0 %v262_v32 }
  0x55   :  { %488 = vmatprep.subr.mxu0 %v624_v0 }
  0x56   :  { %489 = vmatpush3.msra.mxu0 %v261_v38 }
  0x57   :  { %490 = vmatprep.subr.mxu0 %v624_v0 }
  0x58   :  { %491 = vmatpush3.msra.mxu0 %v260_v39 }
  0x59   :  { %492 = vmatprep.subr.mxu0 %v624_v0 }
  0x5a   :  { %493 = vmatpush3.msra.mxu0 %v259_v40 }
  0xf9   :  { %v160_v34 = vpop.f32.mrf.mxu0 }
  0xfa   :  { %v161_v35 = vadd.f32 %v379_v33, %v160_v34 }
  0xfb   :  { %v426_v36 = vpop.f32.mrf.mxu0 }
  0xfc   :  { %v164_v37 = vmax.f32 %v161_v35, 0.0 }
  0xfe   :  { %460 = vmatmul.mubr.f32.vlgmr.msra.gmra.mxu1 %v164_v37 }
 0x1be   :  { %v254_v42 = vpop.f32.mrf.mxu1 }
 0x1bf   :  { %v255_v43 = vadd.f32 %v381_v41, %v254_v42 }
 0x1c0   :  { %v461_v44 = vpop.f32.mrf.mxu1 }
 0x1c1   :  { %v258_v45 = vmax.f32 %v255_v43, 0.0 }
 0x1c3   :  { %495 = vmatmul.mubr.f32.vlgmr.msra.gmra.mxu0 %v258_v45 }
 0x283   :  { %v348_v47 = vpop.f32.mrf.mxu0 }
 0x284   :  { %v349_v48 = vadd.f32 %v382_v46, %v348_v47 }
 0x285   :  { %v496_v49 = vpop.f32.mrf.mxu0 }
 0x286   :  { %352 = vmax.xlane.f32.xlu0 %v349_v48 }
 0x30f   :  { %v353_v50 = vpop.xlane.xlu0 %352 }
 0x310   :  { %v354_v51 = vsub.f32 %v349_v48, %v353_v50 }
 0x312   :  { %v355_v52 = vmul.f32 1.442695, %v354_v51 }
 0x314   :  { %506 = vpow2.f32 %v355_v52 }
 0x321   :  { %v507_v53 = vpop.eup %506 }
 0x322   :  { %357 = vadd.xlane.f32.xlu0 %v507_v53 }
 0x3ab   :  { %v358_v54 = vpop.xlane.xlu0 %357 }
 0x3ac   :  { %508 = vrcp.f32 %v358_v54 }
 0x3b9   :  { %v509_v55 = vpop.eup %508 }
 0x3ba   :  { %v360_v56 = vmul.f32 %v509_v55, %v507_v53 }
 0x3bc   :  { %361 = vst [vmem:[#allocation10] sm:$0xff] %v360_v56 }
 0x3bd   :  { %601 = shalt.err (!%p598_p10)
}
 0x3be   :  { %371 = dma.vmem_to_hbm [thread:$0]  %s369_s24, 128, %s747_s7, [#allocation4]  }
 0x3bf   :  { %616 = dma.done.wait [#allocation4], 128  }
 0x3c0   :  { %617 = vsyncadd [#allocation4], 4294967168 }
 0x3c1   :  { %375 = vsyncpa [#allocation3], 1 }
 0x3c2   :  { %376 = vsyncpa [#allocation6], 1 }
 0x3c3   :  { %377 = vsyncpa [#allocation9], 1 }
 0x3c4   :  { %378 = vsyncpa [#allocation4], 1 }

</bundles_post_ra>
